<compile_context>
chip_gen: v6e
topology: v6e:2x2x1
jax: 0.10.0
libtpu: 0.0.40
codegen_flags: <defaults>
</compile_context>

<pallas_src>
import functools

import jax
import jax.numpy as jnp
from jax.experimental import pallas as pl
from jax.experimental.pallas import tpu as pltpu


_LANE = 128
# itemsize (bytes) -> required sublane multiple for the row-tile size.
_SUBLANE = {8: 8, 4: 8, 2: 16, 1: 32}


def _round_up(a, b):
    return ((a + b - 1) // b) * b


def _default_num_shards():
    """2 on dual-TensorCore chips (v4 / v5p / v7x), else 1."""
    try:
        kind = jax.devices()[0].device_kind.lower()
    except Exception:  # defensive: never let device probing break tracing
        return 1
    if "lite" in kind:  # v4i / v5e / v6e "lite" parts are single-TC
        return 1
    if any(tag in kind for tag in ("v4", "v5p", "v7", "7x")):
        return 2
    return 1


def _soft_dice_partials_kernel(x_ref, t_ref, o_ref, *, block_rows,
                               blocks_per_shard, valid_rows, apply_sigmoid):
    """Accumulate per-shard partial sums of (x*t, x+t) into o_ref.

    o_ref block is (1, 2, 8, 128) f32 and stays resident across the inner
    ("arbitrary") grid axis, acting as the accumulator.
    """
    s = pl.program_id(0)   # shard ("parallel")
    j = pl.program_id(1)   # row-tile within shard ("arbitrary")

    x = x_ref[...].astype(jnp.float32)
    t = t_ref[...].astype(jnp.float32)
    if apply_sigmoid:
        # Optional producer fusion.  0.5*(tanh(0.5x)+1) == sigmoid(x) but
        # costs one EUP op instead of exp + divide (matters on v5e).
        x = 0.5 * (jnp.tanh(0.5 * x) + 1.0)

    def fold(v):
        # (block_rows,128) -> (block_rows//8, 8, 128) maps onto the same
        # vregs (no relayout); summing the leading axis is pure VALU adds.
        return jnp.sum(v.reshape(-1, 8, _LANE), axis=0)

    @pl.when(j == 0)
    def _():
        o_ref[...] = jnp.zeros_like(o_ref)

    def accumulate(xv, tv):
        o_ref[0, 0] += fold(xv * tv)   # intersection partials
        o_ref[0, 1] += fold(xv + tv)   # sum(logits) + sum(targets) partials

    if valid_rows is None:
        # Tiling exactly covers the rows: no masking anywhere.
        accumulate(x, t)
    else:
        row0 = (s * blocks_per_shard + j) * block_rows
        is_interior = row0 + block_rows <= valid_rows

        @pl.when(is_interior)
        def _():
            accumulate(x, t)

        @pl.when(jnp.logical_not(is_interior))
        def _():
            # Boundary / overhang tile: zero rows past the logical end.
            # jnp.where is a select (not a multiply), so NaN garbage rows —
            # including post-sigmoid ones — cannot leak into the sums.
            rid = jax.lax.broadcasted_iota(jnp.int32, x.shape, 0) + row0
            keep = rid < valid_rows
            accumulate(jnp.where(keep, x, 0.0), jnp.where(keep, t, 0.0))


def soft_dice_loss(logits, targets, smooth=1.0, *, target_block_bytes=2 << 20,
                   num_shards=None, apply_sigmoid=False):
    """Equivalent of SoftDiceLoss().forward(logits, targets).

    loss = 1 - (2*sum(x*t) + smooth) / (sum(x) + sum(t) + smooth)

    Inputs may be any float/int/bool dtype; they are cast to f32 in-register
    inside the kernel, so pass bf16 logits / int8 targets to halve or quarter
    HBM traffic.  `apply_sigmoid=True` optionally fuses a sigmoid on `logits`
    into the kernel (not part of the reference module; default off).
    """
    x = logits.reshape(-1)
    t = targets.reshape(-1)
    n = x.shape[0]
    rows, tail = divmod(n, _LANE)
    smooth = jnp.float32(smooth)

    def _plain_partials(xv, tv):
        xv = xv.astype(jnp.float32)
        tv = tv.astype(jnp.float32)
        if apply_sigmoid:
            xv = 0.5 * (jnp.tanh(0.5 * xv) + 1.0)
        return jnp.sum(xv * tv), jnp.sum(xv) + jnp.sum(tv)

    # Tiny input: nothing to gain from a kernel.
    if rows == 0:
        inter, sxt = _plain_partials(x, t)
        return 1.0 - (2.0 * inter + smooth) / (sxt + smooth)

    if tail:
        # Sub-128-element tail: tiny plain-jnp reduction, combined below.
        inter_t, sxt_t = _plain_partials(x[rows * _LANE:], t[rows * _LANE:])
        # TODO(synk): this prefix slice still materializes a near-full copy
        # when n % 128 != 0; removing it needs a 1-D manual-DMA block path.
        x = x[: rows * _LANE]
        t = t[: rows * _LANE]
    else:
        inter_t = sxt_t = jnp.float32(0.0)

    # Zero-copy bitcast reshape when tail == 0 (no padding anywhere).
    x2 = x.reshape(rows, _LANE)
    t2 = t.reshape(rows, _LANE)

    isx = x2.dtype.itemsize
    ist = t2.dtype.itemsize
    sub = max(_SUBLANE.get(isx, 8), _SUBLANE.get(ist, 8))

    # Dtype-aware tile: ~target_block_bytes per input pipeline buffer, with a
    # cap so the in-kernel f32 temporaries stay modest on narrow dtypes.
    rows_by_input = target_block_bytes // (_LANE * max(isx, ist))
    rows_by_f32_temp = (4 << 20) // (_LANE * 4)
    block_rows = max(sub, (min(rows_by_input, rows_by_f32_temp) // sub) * sub)
    block_rows = min(block_rows, _round_up(rows, sub))

    total_blocks = pl.cdiv(rows, block_rows)
    if num_shards is None:
        num_shards = _default_num_shards()
    num_shards = max(1, min(num_shards, total_blocks))
    blocks_per_shard = pl.cdiv(total_blocks, num_shards)

    # Mask only when the tiling does not exactly cover the rows.
    capacity = num_shards * blocks_per_shard * block_rows
    valid_rows = rows if capacity != rows else None

    if valid_rows is None:
        row_map = lambda s, j: (s * blocks_per_shard + j, 0)
    else:
        # Clamp so overhang tiles never address past the last real block
        # (their rows are zeroed in-kernel by the boundary mask).
        row_map = lambda s, j: (
            jnp.minimum(s * blocks_per_shard + j, total_blocks - 1), 0)

    kernel = functools.partial(
        _soft_dice_partials_kernel,
        block_rows=block_rows,
        blocks_per_shard=blocks_per_shard,
        valid_rows=valid_rows,
        apply_sigmoid=apply_sigmoid,
    )

    # 2 inputs x 2 pipeline buffers + room for a few f32-sized temporaries.
    pipeline_bytes = 2 * block_rows * _LANE * (isx + ist)
    temps_bytes = 3 * block_rows * _LANE * 4
    vmem_limit = int(min(48 << 20,
                         max(32 << 20, pipeline_bytes + temps_bytes + (4 << 20))))

    partials = pl.pallas_call(
        kernel,
        out_shape=jax.ShapeDtypeStruct((num_shards, 2, 8, _LANE), jnp.float32),
        grid_spec=pltpu.PrefetchScalarGridSpec(
            num_scalar_prefetch=0,
            grid=(num_shards, blocks_per_shard),
            in_specs=[
                pl.BlockSpec((block_rows, _LANE), row_map),
                pl.BlockSpec((block_rows, _LANE), row_map),
            ],
            out_specs=pl.BlockSpec((1, 2, 8, _LANE),
                                   lambda s, j: (s, 0, 0, 0)),
        ),
        compiler_params=pltpu.CompilerParams(
            dimension_semantics=("parallel", "arbitrary"),
            vmem_limit_bytes=vmem_limit,
        ),
    )(x2, t2)

    sums = jnp.sum(partials, axis=(0, 2, 3))   # (2,) tiny final reduction
    inter = sums[0] + inter_t
    sxt = sums[1] + sxt_t
    return 1.0 - (2.0 * inter + smooth) / (sxt + smooth)


if __name__ == "__main__":
    # SoftDiceLoss has no learnable parameters (weight arg is unused).
    key = jax.random.PRNGKey(0)
    k1, k2 = jax.random.split(key)

    # NCHW-style shapes, consistent with a segmentation loss.
    logits = jax.nn.sigmoid(
        jax.random.normal(k1, (2, 4, 16, 16), dtype=jnp.float32)
    )
    targets = (
        jax.random.uniform(k2, (2, 4, 16, 16), dtype=jnp.float32) > 0.5
    ).astype(jnp.float32)

    loss_fn = jax.jit(soft_dice_loss)
    loss = jax.block_until_ready(loss_fn(logits, targets))

    # Pure-JAX reference check of the exact PyTorch semantics.
    iflat = logits.reshape(-1)
    tflat = targets.reshape(-1)
    inter = jnp.sum(iflat * tflat)
    ref = 1.0 - (2.0 * inter + 1.0) / (jnp.sum(iflat) + jnp.sum(tflat) + 1.0)
    assert jnp.allclose(loss, ref, rtol=1e-5, atol=1e-6), (loss, ref)

    print("KERNEL_OK")
</pallas_src>

<mosaic_0001>
module attributes {stable_mosaic.version = 11 : i64} {
  func.func @_soft_dice_partials_kernel(%arg0: i32, %arg1: i32, %arg2: memref<16x128xf32, #tpu.memory_space<vmem>>, %arg3: memref<16x128xf32, #tpu.memory_space<vmem>>, %arg4: memref<1x2x8x128xf32, #tpu.memory_space<vmem>>) attributes {dimension_semantics = [#tpu.dimension_semantics<parallel>, #tpu.dimension_semantics<arbitrary>], iteration_bounds = array<i64: 1, 1>, scalar_prefetch = 0 : i64, scratch_operands = 0 : i64, tpu.core_type = #tpu.core_type<tc>, window_params = [{transform_indices = @transform_0, window_bounds = array<i64: 16, 128>}, {transform_indices = @transform_1, window_bounds = array<i64: 16, 128>}, {transform_indices = @transform_2, window_bounds = array<i64: 1, 2, 8, 128>}]} {
    %c0 = arith.constant 0 : index
    %c0_0 = arith.constant 0 : index
    %0 = vector.load %arg2[%c0, %c0_0] : memref<16x128xf32, #tpu.memory_space<vmem>>, vector<16x128xf32>
    %c0_1 = arith.constant 0 : index
    %c0_2 = arith.constant 0 : index
    %1 = vector.load %arg3[%c0_1, %c0_2] : memref<16x128xf32, #tpu.memory_space<vmem>>, vector<16x128xf32>
    %c0_i32 = arith.constant 0 : i32
    %2 = arith.cmpi eq, %arg1, %c0_i32 : i32
    %3 = arith.extui %2 : i1 to i32
    %c0_i32_3 = arith.constant 0 : i32
    %4 = arith.cmpi ne, %3, %c0_i32_3 : i32
    scf.if %4 {
      %cst_20 = arith.constant 0.000000e+00 : f32
      %23 = vector.broadcast %cst_20 : f32 to vector<1x2x8x128xf32>
      %c0_21 = arith.constant 0 : index
      %c0_22 = arith.constant 0 : index
      %c0_23 = arith.constant 0 : index
      %c0_24 = arith.constant 0 : index
      %24 = vector.load %arg4[%c0_21, %c0_22, %c0_23, %c0_24] : memref<1x2x8x128xf32, #tpu.memory_space<vmem>>, vector<1x2x8x128xf32>
      tpu.vector_store %arg4[%c0_21, %c0_22, %c0_23, %c0_24], %23 {strides = array<i32>} : memref<1x2x8x128xf32, #tpu.memory_space<vmem>>, vector<1x2x8x128xf32>,
    } else {
    }
    %c0_4 = arith.constant 0 : index
    %c0_5 = arith.constant 0 : index
    %c0_6 = arith.constant 0 : index
    %c0_7 = arith.constant 0 : index
    %5 = vector.load %arg4[%c0_4, %c0_5, %c0_6, %c0_7] : memref<1x2x8x128xf32, #tpu.memory_space<vmem>>, vector<1x1x8x128xf32>
    %6 = vector.shape_cast %5 : vector<1x1x8x128xf32> to vector<8x128xf32>
    %7 = arith.mulf %0, %1 : vector<16x128xf32>
    %8 = vector.shape_cast %7 : vector<16x128xf32> to vector<2x8x128xf32>
    %cst = arith.constant dense<0.000000e+00> : vector<8x128xf32>
    %9 = vector.multi_reduction <add>, %8, %cst [0] : vector<2x8x128xf32> to vector<8x128xf32>
    %10 = arith.addf %6, %9 : vector<8x128xf32>
    %c0_8 = arith.constant 0 : index
    %c0_9 = arith.constant 0 : index
    %c0_10 = arith.constant 0 : index
    %c0_11 = arith.constant 0 : index
    %11 = vector.load %arg4[%c0_8, %c0_9, %c0_10, %c0_11] : memref<1x2x8x128xf32, #tpu.memory_space<vmem>>, vector<1x1x8x128xf32>
    %12 = vector.shape_cast %11 : vector<1x1x8x128xf32> to vector<8x128xf32>
    %13 = vector.shape_cast %10 : vector<8x128xf32> to vector<1x1x8x128xf32>
    tpu.vector_store %arg4[%c0_8, %c0_9, %c0_10, %c0_11], %13 {strides = array<i32>} : memref<1x2x8x128xf32, #tpu.memory_space<vmem>>, vector<1x1x8x128xf32>,
    %c0_12 = arith.constant 0 : index
    %c1 = arith.constant 1 : index
    %c0_13 = arith.constant 0 : index
    %c0_14 = arith.constant 0 : index
    %14 = vector.load %arg4[%c0_12, %c1, %c0_13, %c0_14] : memref<1x2x8x128xf32, #tpu.memory_space<vmem>>, vector<1x1x8x128xf32>
    %15 = vector.shape_cast %14 : vector<1x1x8x128xf32> to vector<8x128xf32>
    %16 = arith.addf %0, %1 : vector<16x128xf32>
    %17 = vector.shape_cast %16 : vector<16x128xf32> to vector<2x8x128xf32>
    %cst_15 = arith.constant dense<0.000000e+00> : vector<8x128xf32>
    %18 = vector.multi_reduction <add>, %17, %cst_15 [0] : vector<2x8x128xf32> to vector<8x128xf32>
    %19 = arith.addf %15, %18 : vector<8x128xf32>
    %c0_16 = arith.constant 0 : index
    %c1_17 = arith.constant 1 : index
    %c0_18 = arith.constant 0 : index
    %c0_19 = arith.constant 0 : index
    %20 = vector.load %arg4[%c0_16, %c1_17, %c0_18, %c0_19] : memref<1x2x8x128xf32, #tpu.memory_space<vmem>>, vector<1x1x8x128xf32>
    %21 = vector.shape_cast %20 : vector<1x1x8x128xf32> to vector<8x128xf32>
    %22 = vector.shape_cast %19 : vector<8x128xf32> to vector<1x1x8x128xf32>
    tpu.vector_store %arg4[%c0_16, %c1_17, %c0_18, %c0_19], %22 {strides = array<i32>} : memref<1x2x8x128xf32, #tpu.memory_space<vmem>>, vector<1x1x8x128xf32>,
    return
  }
  func.func @transform_0(%arg0: i32, %arg1: i32) -> (i32, i32) {
    %c1_i32 = arith.constant 1 : i32
    %0 = arith.muli %arg0, %c1_i32 : i32
    %1 = arith.addi %0, %arg1 : i32
    %c0_i32 = arith.constant 0 : i32
    %c0_i32_0 = arith.constant 0 : i32
    return %1, %c0_i32 : i32, i32
  }
  func.func @transform_1(%arg0: i32, %arg1: i32) -> (i32, i32) {
    %c1_i32 = arith.constant 1 : i32
    %0 = arith.muli %arg0, %c1_i32 : i32
    %1 = arith.addi %0, %arg1 : i32
    %c0_i32 = arith.constant 0 : i32
    %c0_i32_0 = arith.constant 0 : i32
    return %1, %c0_i32 : i32, i32
  }
  func.func @transform_2(%arg0: i32, %arg1: i32) -> (i32, i32, i32, i32) {
    %c0_i32 = arith.constant 0 : i32
    %c0_i32_0 = arith.constant 0 : i32
    %c0_i32_1 = arith.constant 0 : i32
    %c0_i32_2 = arith.constant 0 : i32
    return %arg0, %c0_i32, %c0_i32_0, %c0_i32_1 : i32, i32, i32, i32
  }
}

</mosaic_0001>

<bundles_post_ra>
// kernel: soft_dice_loss.1
= control target key start
LH: loop header
LB: loop body
LE: loop exit
PB: predicated region body
PF: predicated region fallthrough
CT: control target
= control target key end

     0   :  { %s130_s0 = inlined_call_operand.vmem [shape: f32[16,128], index: 0, kind: input, shape index: {}]   ;;  %s131_s1 = inlined_call_operand.vmem [shape: f32[16,128], index: 1, kind: input, shape index: {}]   ;;  %s132_s2 = inlined_call_operand.vmem [shape: f32[1,2,8,128], index: 2, kind: output, shape index: {}]  }
   0x1   :  { %v55_v0 = vld [vmem:[%s130_s0] sm:$0xff]  ;;  %v56_v1 = vld [vmem:[%s130_s0 + $0x8] sm:$0xff] }
   0x2   :  { %v57_v2 = vld [vmem:[%s131_s1] sm:$0xff]  ;;  %v58_v3 = vld [vmem:[%s131_s1 + $0x8] sm:$0xff] }
   0x3   :  { %v66_v4 = vmul.f32 %v57_v2, %v55_v0  ;;  %v73_v5 = vadd.f32 %v57_v2, %v55_v0  ;;  %v67_v6 = vmul.f32 %v58_v3, %v56_v1  ;;  %v74_v7 = vadd.f32 %v58_v3, %v56_v1 }
   0x5   :  { %v68_v8 = vadd.f32 %v67_v6, %v66_v4  ;;  %v75_v9 = vadd.f32 %v74_v7, %v73_v5 }
   0x7   :  { %70 = vst [vmem:[%s132_s2] sm:$0xff] %v68_v8  ;;  %95 = vst [vmem:[%s132_s2 + $0x8] sm:$0xff] %v75_v9 }

</bundles_post_ra>
